<compile_context>
chip_gen: v6e
topology: v6e:2x2x1
jax: 0.10.0
libtpu: 0.0.40
codegen_flags: <defaults>
</compile_context>

<pallas_src>
import functools

import jax
import jax.numpy as jnp
from jax.experimental import pallas as pl
from jax.experimental.pallas import tpu as pltpu


def _residual_block_kernel(x_ref, m_ref, wf_ref, bf_ref, w2_ref, b2_ref, o_ref,
                           *, n_out, lanes, compute_dtype):
    """One grid step: a (Cin, lanes) slab with several batch elements stacked
    along the lane axis (each segment of length L, zero padded to `lanes`)."""
    x = x_ref[...].astype(jnp.float32)        # (Cin, lanes)
    masks = m_ref[...]                        # (2, lanes) f32 {0, 1}
    not_first = masks[0:1, :]                 # 0 where l == 0 inside a segment
    not_last = masks[1:2, :]                  # 0 where l == L-1 inside a segment

    def im2col(v):                            # v: (C, lanes) f32 -> (3C, lanes) bf16
        left = pltpu.roll(v, shift=1, axis=1) * not_first           # v[:, l-1]
        right = pltpu.roll(v, shift=lanes - 1, axis=1) * not_last   # v[:, l+1]
        return jnp.concatenate([left, v, right], axis=0).astype(compute_dtype)

    # conv1 (k=3) + 1x1 shortcut fused into one MXU pass.
    z = jnp.dot(wf_ref[...], im2col(x), preferred_element_type=jnp.float32)
    z = z + bf_ref[...]                       # (2*Cout, lanes) f32
    h = jnp.maximum(z[:n_out], 0.0)           # ReLU(conv1(x))
    residual = z[n_out:]                      # shortcut(x)

    # conv2 (k=3), single MXU pass.
    y = jnp.dot(w2_ref[...], im2col(h), preferred_element_type=jnp.float32)
    y = y + b2_ref[...]
    o_ref[...] = jnp.maximum(y + residual, 0.0).astype(o_ref.dtype)


def residual_block(x, w1, b1, w2, b2, ws, bs, *, compute_dtype=jnp.bfloat16):
    """x: (B, Cin, L); weights in PyTorch Conv1d layout:
       w1 (Cout, Cin, 3), b1 (Cout,), w2 (Cout, Cout, 3), b2 (Cout,),
       ws (Cout, Cin, 1), bs (Cout,)."""
    B, Cin, L = x.shape
    Cout = w1.shape[0]

    # ---- how many batch elements to stack along the lane axis per grid step ----
    lane_target = 512
    bt_cap = max(1, lane_target // L)
    BT = max(1, min(bt_cap, B // 2)) if B >= 2 else 1   # keep >= 2 grid steps
    G = pl.cdiv(B, BT)
    Bp = G * BT
    if Bp != B:
        x = jnp.concatenate([x, jnp.zeros((Bp - B, Cin, L), x.dtype)], axis=0)

    # (B, Cin, L) -> (G, Cin, BT*L): batches stacked along the lane axis.
    xs = x.reshape(G, BT, Cin, L).transpose(0, 2, 1, 3).reshape(G, Cin, BT * L)
    LL = ((BT * L + 127) // 128) * 128                  # lane-dense tile width
    if LL != BT * L:
        xs = jnp.pad(xs, ((0, 0), (0, 0), (0, LL - BT * L)))
    xs = xs.astype(compute_dtype)

    # ---- boundary masks: zero the shifted taps that cross a length-L segment ----
    lpos = jnp.arange(LL) % L
    edge_mask = jnp.stack([(lpos != 0), (lpos != L - 1)]).astype(jnp.float32)  # (2, LL)

    # ---- weights in im2col layout; conv1 + 1x1 shortcut fused ----
    w1f = jnp.transpose(w1, (0, 2, 1)).reshape(Cout, 3 * Cin)   # taps [-1, 0, +1]
    zpad = jnp.zeros((Cout, Cin), w1.dtype)
    wsf = jnp.concatenate([zpad, ws[:, :, 0], zpad], axis=1)    # center tap only
    wf = jnp.concatenate([w1f, wsf], axis=0).astype(compute_dtype)   # (2*Cout, 3*Cin)
    bf_ = jnp.concatenate([b1, bs]).reshape(2 * Cout, 1).astype(jnp.float32)
    w2f = jnp.transpose(w2, (0, 2, 1)).reshape(Cout, 3 * Cout).astype(compute_dtype)
    b2f = b2.reshape(Cout, 1).astype(jnp.float32)

    kernel = functools.partial(
        _residual_block_kernel, n_out=Cout, lanes=LL, compute_dtype=compute_dtype)

    grid_spec = pltpu.PrefetchScalarGridSpec(
        num_scalar_prefetch=0,
        grid=(G,),
        in_specs=[
            pl.BlockSpec((None, Cin, LL), lambda g: (g, 0, 0)),     # x slab
            pl.BlockSpec((2, LL), lambda g: (0, 0)),                # edge masks
            pl.BlockSpec((2 * Cout, 3 * Cin), lambda g: (0, 0)),    # fused conv1+shortcut W
            pl.BlockSpec((2 * Cout, 1), lambda g: (0, 0)),          # fused bias
            pl.BlockSpec((Cout, 3 * Cout), lambda g: (0, 0)),       # conv2 W
            pl.BlockSpec((Cout, 1), lambda g: (0, 0)),              # conv2 bias
        ],
        out_specs=pl.BlockSpec((None, Cout, LL), lambda g: (g, 0, 0)),
    )

    flops = 2 * G * LL * (2 * Cout * 3 * Cin + Cout * 3 * Cout)
    bytes_accessed = int(
        xs.size * 2 + edge_mask.size * 4 + wf.size * 2 + bf_.size * 4
        + w2f.size * 2 + b2f.size * 4 + G * Cout * LL * 4)

    out = pl.pallas_call(
        kernel,
        out_shape=jax.ShapeDtypeStruct((G, Cout, LL), jnp.float32),
        grid_spec=grid_spec,
        compiler_params=pltpu.CompilerParams(dimension_semantics=("parallel",)),
        cost_estimate=pl.CostEstimate(
            flops=flops, transcendentals=0, bytes_accessed=bytes_accessed),
    )(xs, edge_mask, wf, bf_, w2f, b2f)

    # (G, Cout, LL) -> (B, Cout, L)
    out = out[:, :, : BT * L].reshape(G, Cout, BT, L).transpose(0, 2, 1, 3)
    return out.reshape(Bp, Cout, L)[:B]


def _reference(x, w1, b1, w2, b2, ws, bs):
    """Pure-JAX reference using lax.conv_general_dilated (matches F.conv1d)."""
    def conv1d(x, w, b, pad):
        y = jax.lax.conv_general_dilated(
            x, w, window_strides=(1,), padding=[(pad, pad)],
            dimension_numbers=("NCH", "OIH", "NCH"))
        return y + b[None, :, None]

    residual = conv1d(x, ws, bs, 0)
    h = jax.nn.relu(conv1d(x, w1, b1, 1))
    y = conv1d(h, w2, b2, 1)
    return jax.nn.relu(y + residual)


if __name__ == "__main__":
    B, Cin, Cout, L = 2, 4, 8, 16

    key = jax.random.PRNGKey(0)
    ks = jax.random.split(key, 7)
    x = jax.random.normal(ks[0], (B, Cin, L), dtype=jnp.float32)
    w1 = 0.3 * jax.random.normal(ks[1], (Cout, Cin, 3), dtype=jnp.float32)
    b1 = 0.1 * jax.random.normal(ks[2], (Cout,), dtype=jnp.float32)
    w2 = 0.3 * jax.random.normal(ks[3], (Cout, Cout, 3), dtype=jnp.float32)
    b2 = 0.1 * jax.random.normal(ks[4], (Cout,), dtype=jnp.float32)
    ws = 0.3 * jax.random.normal(ks[5], (Cout, Cin, 1), dtype=jnp.float32)
    bs = 0.1 * jax.random.normal(ks[6], (Cout,), dtype=jnp.float32)

    out = jax.block_until_ready(residual_block(x, w1, b1, w2, b2, ws, bs))
    ref = jax.block_until_ready(_reference(x, w1, b1, w2, b2, ws, bs))

    assert out.shape == (B, Cout, L)
    max_err = float(jnp.max(jnp.abs(out - ref)))
    # bf16 MXU operands -> loosened tolerance vs. the f32 reference.
    assert jnp.allclose(out, ref, atol=5e-2, rtol=5e-2), max_err

    print("KERNEL_OK")
</pallas_src>

<mosaic_0001>
module attributes {stable_mosaic.version = 11 : i64} {
  func.func @_residual_block_kernel(%arg0: i32, %arg1: memref<1x4x128xbf16, #tpu.memory_space<vmem>>, %arg2: memref<2x128xf32, #tpu.memory_space<vmem>>, %arg3: memref<16x12xbf16, #tpu.memory_space<vmem>>, %arg4: memref<16x1xf32, #tpu.memory_space<vmem>>, %arg5: memref<8x24xbf16, #tpu.memory_space<vmem>>, %arg6: memref<8x1xf32, #tpu.memory_space<vmem>>, %arg7: memref<1x8x128xf32, #tpu.memory_space<vmem>>) attributes {dimension_semantics = [#tpu.dimension_semantics<parallel>], iteration_bounds = array<i64: 2>, scalar_prefetch = 0 : i64, scratch_operands = 0 : i64, tpu.core_type = #tpu.core_type<tc>, window_params = [{transform_indices = @transform_0, window_bounds = array<i64: 1, 4, 128>}, {pipeline_mode = #tpu.pipeline_mode<synchronous>, transform_indices = @transform_1, window_bounds = array<i64: 2, 128>}, {pipeline_mode = #tpu.pipeline_mode<synchronous>, transform_indices = @transform_2, window_bounds = array<i64: 16, 12>}, {pipeline_mode = #tpu.pipeline_mode<synchronous>, transform_indices = @transform_3, window_bounds = array<i64: 16, 1>}, {pipeline_mode = #tpu.pipeline_mode<synchronous>, transform_indices = @transform_4, window_bounds = array<i64: 8, 24>}, {pipeline_mode = #tpu.pipeline_mode<synchronous>, transform_indices = @transform_5, window_bounds = array<i64: 8, 1>}, {transform_indices = @transform_6, window_bounds = array<i64: 1, 8, 128>}]} {
    %c0 = arith.constant 0 : index
    %c0_0 = arith.constant 0 : index
    %c0_1 = arith.constant 0 : index
    %0 = vector.load %arg1[%c0, %c0_0, %c0_1] : memref<1x4x128xbf16, #tpu.memory_space<vmem>>, vector<1x4x128xbf16>
    %1 = vector.shape_cast %0 : vector<1x4x128xbf16> to vector<4x128xbf16>
    %2 = arith.extf %1 : vector<4x128xbf16> to vector<4x128xf32>
    %c0_2 = arith.constant 0 : index
    %c0_3 = arith.constant 0 : index
    %3 = vector.load %arg2[%c0_2, %c0_3] : memref<2x128xf32, #tpu.memory_space<vmem>>, vector<2x128xf32>
    %4 = vector.extract_strided_slice %3 {offsets = [0, 0], sizes = [1, 128], strides = [1, 1]} : vector<2x128xf32> to vector<1x128xf32>
    %5 = vector.extract_strided_slice %3 {offsets = [1, 0], sizes = [1, 128], strides = [1, 1]} : vector<2x128xf32> to vector<1x128xf32>
    %c0_4 = arith.constant 0 : index
    %c0_5 = arith.constant 0 : index
    %6 = vector.load %arg3[%c0_4, %c0_5] : memref<16x12xbf16, #tpu.memory_space<vmem>>, vector<16x12xbf16>
    %c1_i32 = arith.constant 1 : i32
    %7 = tpu.dynamic_rotate %2 by %c1_i32 dim 1 : vector<4x128xf32>, i32 -> vector<4x128xf32>
    %8 = vector.broadcast %4 : vector<1x128xf32> to vector<4x128xf32>
    %9 = arith.mulf %7, %8 : vector<4x128xf32>
    %c127_i32 = arith.constant 127 : i32
    %10 = tpu.dynamic_rotate %2 by %c127_i32 dim 1 : vector<4x128xf32>, i32 -> vector<4x128xf32>
    %11 = vector.broadcast %5 : vector<1x128xf32> to vector<4x128xf32>
    %12 = arith.mulf %10, %11 : vector<4x128xf32>
    %13 = tpu.concatenate %9, %2, %12 in 0 : vector<4x128xf32>, vector<4x128xf32>, vector<4x128xf32> -> vector<12x128xf32>
    %14 = arith.truncf %13 : vector<12x128xf32> to vector<12x128xbf16>
    %cst = arith.constant dense<0.000000e+00> : vector<16x128xf32>
    %15 = tpu.matmul %6, %14, %cst {dimension_numbers = #tpu.dot_dimension_numbers<[1], [0], [0], [1], [0, 0, 1, 1], [], []>} : vector<16x12xbf16>, vector<12x128xbf16>, vector<16x128xf32> -> vector<16x128xf32>
    %c0_6 = arith.constant 0 : index
    %c0_7 = arith.constant 0 : index
    %16 = vector.load %arg4[%c0_6, %c0_7] : memref<16x1xf32, #tpu.memory_space<vmem>>, vector<16x1xf32>
    %17 = vector.broadcast %16 : vector<16x1xf32> to vector<16x128xf32>
    %18 = arith.addf %15, %17 : vector<16x128xf32>
    %19 = vector.extract_strided_slice %18 {offsets = [0, 0], sizes = [8, 128], strides = [1, 1]} : vector<16x128xf32> to vector<8x128xf32>
    %cst_8 = arith.constant 0.000000e+00 : f32
    %20 = vector.broadcast %cst_8 : f32 to vector<8x128xf32>
    %21 = arith.maximumf %19, %20 : vector<8x128xf32>
    %22 = vector.extract_strided_slice %18 {offsets = [8, 0], sizes = [8, 128], strides = [1, 1]} : vector<16x128xf32> to vector<8x128xf32>
    %c0_9 = arith.constant 0 : index
    %c0_10 = arith.constant 0 : index
    %23 = vector.load %arg5[%c0_9, %c0_10] : memref<8x24xbf16, #tpu.memory_space<vmem>>, vector<8x24xbf16>
    %c1_i32_11 = arith.constant 1 : i32
    %24 = tpu.dynamic_rotate %21 by %c1_i32_11 dim 1 : vector<8x128xf32>, i32 -> vector<8x128xf32>
    %25 = vector.broadcast %4 : vector<1x128xf32> to vector<8x128xf32>
    %26 = arith.mulf %24, %25 : vector<8x128xf32>
    %c127_i32_12 = arith.constant 127 : i32
    %27 = tpu.dynamic_rotate %21 by %c127_i32_12 dim 1 : vector<8x128xf32>, i32 -> vector<8x128xf32>
    %28 = vector.broadcast %5 : vector<1x128xf32> to vector<8x128xf32>
    %29 = arith.mulf %27, %28 : vector<8x128xf32>
    %30 = tpu.concatenate %26, %21, %29 in 0 : vector<8x128xf32>, vector<8x128xf32>, vector<8x128xf32> -> vector<24x128xf32>
    %31 = arith.truncf %30 : vector<24x128xf32> to vector<24x128xbf16>
    %cst_13 = arith.constant dense<0.000000e+00> : vector<8x128xf32>
    %32 = tpu.matmul %23, %31, %cst_13 {dimension_numbers = #tpu.dot_dimension_numbers<[1], [0], [0], [1], [0, 0, 1, 1], [], []>} : vector<8x24xbf16>, vector<24x128xbf16>, vector<8x128xf32> -> vector<8x128xf32>
    %c0_14 = arith.constant 0 : index
    %c0_15 = arith.constant 0 : index
    %33 = vector.load %arg6[%c0_14, %c0_15] : memref<8x1xf32, #tpu.memory_space<vmem>>, vector<8x1xf32>
    %34 = vector.broadcast %33 : vector<8x1xf32> to vector<8x128xf32>
    %35 = arith.addf %32, %34 : vector<8x128xf32>
    %36 = arith.addf %35, %22 : vector<8x128xf32>
    %cst_16 = arith.constant 0.000000e+00 : f32
    %37 = vector.broadcast %cst_16 : f32 to vector<8x128xf32>
    %38 = arith.maximumf %36, %37 : vector<8x128xf32>
    %c0_17 = arith.constant 0 : index
    %c0_18 = arith.constant 0 : index
    %c0_19 = arith.constant 0 : index
    %39 = vector.load %arg7[%c0_17, %c0_18, %c0_19] : memref<1x8x128xf32, #tpu.memory_space<vmem>>, vector<1x8x128xf32>
    %40 = vector.shape_cast %39 : vector<1x8x128xf32> to vector<8x128xf32>
    %41 = vector.shape_cast %38 : vector<8x128xf32> to vector<1x8x128xf32>
    tpu.vector_store %arg7[%c0_17, %c0_18, %c0_19], %41 {strides = array<i32>} : memref<1x8x128xf32, #tpu.memory_space<vmem>>, vector<1x8x128xf32>,
    return
  }
  func.func @transform_0(%arg0: i32) -> (i32, i32, i32) {
    %c0_i32 = arith.constant 0 : i32
    %c0_i32_0 = arith.constant 0 : i32
    %c0_i32_1 = arith.constant 0 : i32
    return %arg0, %c0_i32, %c0_i32_0 : i32, i32, i32
  }
  func.func @transform_1(%arg0: i32) -> (i32, i32) {
    %c0_i32 = arith.constant 0 : i32
    %c0_i32_0 = arith.constant 0 : i32
    %c0_i32_1 = arith.constant 0 : i32
    return %c0_i32, %c0_i32_0 : i32, i32
  }
  func.func @transform_2(%arg0: i32) -> (i32, i32) {
    %c0_i32 = arith.constant 0 : i32
    %c0_i32_0 = arith.constant 0 : i32
    %c0_i32_1 = arith.constant 0 : i32
    return %c0_i32, %c0_i32_0 : i32, i32
  }
  func.func @transform_3(%arg0: i32) -> (i32, i32) {
    %c0_i32 = arith.constant 0 : i32
    %c0_i32_0 = arith.constant 0 : i32
    %c0_i32_1 = arith.constant 0 : i32
    return %c0_i32, %c0_i32_0 : i32, i32
  }
  func.func @transform_4(%arg0: i32) -> (i32, i32) {
    %c0_i32 = arith.constant 0 : i32
    %c0_i32_0 = arith.constant 0 : i32
    %c0_i32_1 = arith.constant 0 : i32
    return %c0_i32, %c0_i32_0 : i32, i32
  }
  func.func @transform_5(%arg0: i32) -> (i32, i32) {
    %c0_i32 = arith.constant 0 : i32
    %c0_i32_0 = arith.constant 0 : i32
    %c0_i32_1 = arith.constant 0 : i32
    return %c0_i32, %c0_i32_0 : i32, i32
  }
  func.func @transform_6(%arg0: i32) -> (i32, i32, i32) {
    %c0_i32 = arith.constant 0 : i32
    %c0_i32_0 = arith.constant 0 : i32
    %c0_i32_1 = arith.constant 0 : i32
    return %arg0, %c0_i32, %c0_i32_0 : i32, i32, i32
  }
}

</mosaic_0001>

<bundles_post_ra>
// kernel: tpu_custom_call.1
= control target key start
LH: loop header
LB: loop body
LE: loop exit
PB: predicated region body
PF: predicated region fallthrough
CT: control target
= control target key end

     0   :  { %11 = vsyncpa [#allocation3], 0  ;;  %s777_s0 = inlined_call_operand.vmem [shape: bf16[2,4,128], index: 0, kind: input, shape index: {}]   ;;  %s778_s1 = inlined_call_operand.vmem [shape: f32[2,128], index: 1, kind: input, shape index: {}]   ;;  %s779_s2 = inlined_call_operand.vmem [shape: bf16[16,12], index: 2, kind: input, shape index: {}]   ;;  %s780_s3 = inlined_call_operand.vmem [shape: f32[16,1], index: 3, kind: input, shape index: {}]   ;;  %s781_s4 = inlined_call_operand.vmem [shape: bf16[8,24], index: 4, kind: input, shape index: {}]   ;;  %s782_s5 = inlined_call_operand.vmem [shape: f32[8,1], index: 5, kind: input, shape index: {}]   ;;  %s783_s6 = inlined_call_operand.hbm [shape: f32[2,8,128], index: 6, kind: output, shape index: {}]  }
   0x1   :  { %13 = vsyncpa [#allocation3 + $0x1], 0  ;;  %s660_s21 = smov 0   ;;  %s662_s22 = smov 0  }
   0x2   :  { %s664_s23 = smov 0   ;;  %s666_s24 = smov 0  }
   0x3 LB: > { %s681_s25 = sadd.s32 4294967295, %s617_s24   ;;  %s478_s26 = sadd.s32 4294967294, %s617_s24   ;;  %s617_s24 = sphi %s666_s24, %s789_s24   ;;  %s613_s23 = sphi %s664_s23, %s788_s23   ;;  %s609_s22 = sphi %s662_s22, %s787_s22   ;;  %s605_s21 = sphi %s660_s21, %s786_s21  }
   0x4   : > { %s685_s27 = sadd.s32 1, %s617_s24   ;;  %s157_s28 = sadd.s32 1, %s613_s23 }
   0x5   : > { %s154_s29 = ssub.s32 %s617_s24, %s685_s27  ;;  %p167_p0 = scmp.ne.s32.totalorder %s613_s23, %s609_s22 }
   0x6   : > { %p155_p1 = scmp.eq.s32.totalorder %s154_s29, 0  ;;  %p168_p2 = scmp.eq.s32.totalorder %s681_s25, 1 }
   0x7   : > { %p173_p3 = scmp.ne.s32.totalorder %s609_s22, %s605_s21  ;;  %p174_p4 = scmp.eq.s32.totalorder %s478_s26, 1 }
   0x8   : > { %s696_s30 = scalar_select %p155_p1, %s613_s23, %s157_s28  }
   0x9   : > { %p698_p5 = por %p168_p2, %p167_p0  ;;  %p702_p6 = por %p174_p4, %p173_p3 }
   0xa   : > { %p481_p7 = scmp.ge.s32.totalorder %s617_s24, 1  ;;  %p214_p8 = scmp.lt.s32.totalorder %s617_s24, 3 }
   0xc   : > { %p215_p9 = pnand %p481_p7, %p214_p8 }
   0xd   : > { %p243_p10 = scmp.lt.s32.totalorder (!%p215_p9), %s681_s25, 1  ;;  %s621_s16 = smov (!%p215_p9), 1  }
   0xe   : > { %218 = sbr.rel (%p215_p9) target bundleno = 689 (0x2b1), region = 44  ;;  %s623_s17 = smov (!%p215_p9), 127  }
   0xf   : > { %s488_s15 = sshll.u32 (!%p215_p9), %s681_s25, 7 }
  0x10   : > { %s742_s20 = scalar_lea.hbm (!%p215_p9), %s783_s6, %s488_s15 }
  0x13   : > { %v619_v0 = vmov 0.0   ;;  %s244_s9 = scalar_select %p243_p10, %s681_s25, 1  ;;  %vm620_vm0 = vmmov 0   ;;  %v273_v3 = vld [vmem:[%s780_s3] sm:$0xff]  ;;  %v622_v4 = vmov 0   ;;  %v255_v5 = vlaneseq  ;;  %v274_v28 = vld [vmem:[%s780_s3 + $0x8] sm:$0xff] }
  0x14   : > { %496 = vmatprep.subr.bf16.mxu0 %v619_v0  ;;  %502 = vmatprep.subr.bf16.mxu1 %v619_v0  ;;  %v250_v8 = vld [vmem:[%s778_s1] sm:$0x3]  ;;  %vm270_vm1 = vcmask 1043456   ;;  %vm294_vm2 = vcmask 1045504   ;;  %vm290_vm3 = vcmask 97280   ;;  %vm355_vm4 = vcmask 195584  }
  0x15   : > { %s483_s10 = sshll.u32 %s244_s9, 1  ;;  %498 = vmatprep.mubr.msk.bf16.mxu0 %vm620_vm0, %v619_v0  ;;  %506 = vmatprep.mubr.msk.bf16.mxu1 %vm620_vm0, %v619_v0  ;;  %v256_v6 = vshrl.u32 %v255_v5, 7  ;;  %v556_v20 = vld [vmem:[%s779_s2] sm:$0xff]   ;;  %s624_s25 = smov [#allocation2]  }
  0x16   : > { %s246_s13 = scalar_lea.vmem %s777_s0, %s483_s10  ;;  %554 = vset.pattern.permute.xlu1 %v622_v4  ;;  %555 = vset.pattern.permute.xlu0 %v622_v4  ;;  %v349_v29 = vld [vmem:[%s782_s5] sm:$0xff]  ;;  %s561_s29 = sshll.u32 %s624_s25, 4  ;;  %s562_s29 = int_to_ptr.vmem [resolvable:$false] %s561_s29 }
  0x17   : > { %v248_v1 = vld [vmem:[%s246_s13] sm:$0x3]  ;;  %277 = vperm.xlu1 %554, %v273_v3   ;;  %v257_v7 = vsub.s32 0, %v256_v6  ;;  %v264_v9 = vsub.s32 1, %v256_v6  ;;  %s240_s13 = sand.u32 1, %s609_s22   ;;  %s563_s9 = scalar_lea.vmem %s562_s29, 256 }
  0x18   : > { %v249_v2 = vunpack.c.l.bf16 %v248_v1  ;;  %v340_v37 = vld [vmem:[%s781_s4] sm:$0xf]  ;;  %s482_s14 = sshll.u32 %s240_s13, 3  ;;  %s406_s26 = scalar_lea.sflag [#allocation3], %s240_s13 }
  0x19   : > { %v258_v10 = vrot.slane %v250_v8, %v257_v7  ;;  %v265_v12 = vrot.slane %v250_v8, %v264_v9 }
  0x1a   : > { %253 = vrot.lane.b32.xlu0 %v249_v2, %s621_s16  ;;  %v268_v14 = vcombine.low %v249_v2, %v249_v2 }
  0x1e   : > { %260 = vrot.lane.b32.xlu0 %v249_v2, %s623_s17 }
  0x8c   : > { %v254_v11 = vpop.permute.xlu0 %253 }
  0x8d   : > { %v259_v13 = vmul.f32 %v258_v10, %v254_v11 }
  0x8f   : > { %v271_v17 = vsel %vm270_vm1, %v259_v13, %v268_v14 }
  0x90   : > { %v261_v15 = vpop.permute.xlu0 %260 }
  0x91   : > { %v266_v16 = vmul.f32 %v265_v12, %v261_v15 }
  0x92   : > { %v278_v21 = vpop.permute.xlu1 %277 }
  0x93   : > { %v272_v18 = vpack.c.bf16 %v266_v16, %v271_v17 }
  0x95   : > { %v296_v19 = vsel %vm294_vm2, %v272_v18, 0 }
  0x96   : > { %497 = vmatpush3.bf16.msra.mxu0 %v296_v19 }
  0x99   : > { %499 = vmatmul.mubr.msk.bf16.vlgmr.msra.gmra.mxu0 %vm290_vm3, %v556_v20 }
 0x159   : > { %v332_v22 = vpop.f32.mrf.mxu0 }
 0x15a   : > { %v333_v23 = vadd.f32 %v332_v22, %v278_v21 }
 0x15b   : > { %v500_v24 = vpop.f32.mrf.mxu0 }
 0x15c   : > { %v339_v25 = vmax.f32 %v333_v23, 0.0 }
 0x15d   : > { %v335_v26 = vpop.f32.mrf.mxu0 }
 0x15e   : > { %341 = vrot.lane.b32.xlu0 %v339_v25, %s621_s16  ;;  %344 = vrot.lane.b32.xlu1 %v339_v25, %s623_s17  ;;  %s242_s16 = scalar_lea.vmem [#allocation2], %s482_s14 }
 0x15f   : > { %v501_v27 = vpop.f32.mrf.mxu0  ;;  %s419_s17 = sshll.u32 %s242_s16, 4  ;;  %s420_s17 = int_to_ptr.vmem [resolvable:$true] %s419_s17 }
 0x160   : > { %s557_s28 = scalar_lea.vmem %s420_s17, 128  ;;  %p564_p0 = scmp.lt.s32.totalorder %s420_s17, %s562_s29 }
 0x161   : > { %p558_p11 = scmp.ne.s32.totalorder %s420_s17, %s557_s28  ;;  %p565_p1 = scmp.lt.s32.totalorder %s563_s9, %s557_s28 }
 0x162   : > { %282 = vperm.xlu1 %554, %v274_v28   ;;  %352 = vperm.xlu0 %555, %v349_v29  }
 0x163   : > { %p559_p12 = pnand %p558_p11, %p698_p5  ;;  %p566_p2 = por %p565_p1, %p564_p0 }
 0x165   : > { %p560_p13 = pneg %p559_p12 }
 0x167   : > { %p567_p3 = pnand %p566_p2, %p560_p13 }
 0x1d0   : > { %v345_v30 = vpop.permute.xlu1 %344  ;;  %v342_v31 = vpop.permute.xlu0 %341 }
 0x1d1   : > { %v346_v32 = vmul.f32 %v345_v30, %v265_v12  ;;  %v343_v34 = vmul.f32 %v342_v31, %v258_v10 }
 0x1d3   : > { %v348_v33 = vpack.c.bf16 %v346_v32, %v346_v32  ;;  %v347_v36 = vpack.c.bf16 %v339_v25, %v343_v34 }
 0x1d5   : > { %v360_v35 = vsel %vm270_vm1, %v348_v33, 0 }
 0x1d6   : > { %503 = vmatpush3.bf16.msra.mxu1 %v360_v35 }
 0x1d7   : > { %504 = vmatprep.subr.bf16.mxu1 %v619_v0 }
 0x1da   : > { %505 = vmatpush3.bf16.msra.mxu1 %v347_v36 }
 0x1dd   : > { %507 = vmatmul.mubr.msk.bf16.vlgmr.msra.gmra.mxu1 %vm355_vm4, %v340_v37  ;;  %v283_v38 = vpop.permute.xlu1 %282  ;;  %v353_v39 = vpop.permute.xlu0 %352 }
 0x1de   : > { %v336_v41 = vadd.f32 %v335_v26, %v283_v38 }
 0x29d   : > { %v396_v40 = vpop.f32.mrf.mxu1 }
 0x29e   : > { %v397_v42 = vadd.f32 %v396_v40, %v353_v39 }
 0x29f   : > { %v508_v43 = vpop.f32.mrf.mxu1 }
 0x2a0   : > { %v402_v44 = vadd.f32 %v397_v42, %v336_v41 }
 0x2a1   : > { %v399_v45 = vpop.f32.mrf.mxu1 }
 0x2a2   : > { %v403_v46 = vmax.f32 %v402_v44, 0.0 }
 0x2a3   : > { %v509_v47 = vpop.f32.mrf.mxu1 }
 0x2a4   : > { %404 = vst [vmem:[%s242_s16] sm:$0xff] %v403_v46 }
 0x2a5   : > { %570 = shalt.err (!%p567_p3)
}
 0x2a6   : > { %s571_s10 = scalar_lea.hbm %s742_s20, 128  ;;  %s575_s13 = scalar_lea.hbm %s783_s6, 256 }
 0x2a7   : > { %p572_p4 = scmp.ne.s32.totalorder %s742_s20, %s571_s10  ;;  %p576_p9 = scmp.lt.s32.totalorder %s742_s20, %s783_s6 }
 0x2a8   : > { %p577_p10 = scmp.lt.s32.totalorder %s575_s13, %s571_s10 }
 0x2a9   : > { %p573_p7 = pnand %p572_p4, %p698_p5 }
 0x2aa   : > { %p578_p11 = por %p577_p10, %p576_p9 }
 0x2ab   : > { %p574_p8 = pneg %p573_p7 }
 0x2ad   : > { %p579_p12 = pnand %p578_p11, %p574_p8 }
 0x2af   : > { %582 = shalt.err (!%p579_p12)
}
 0x2b0   : > { %510 = dma.vmem_to_hbm [thread:$0]  (%p698_p5), %s420_s17, 128, %s742_s20, %s406_s26  }
 0x2b1 PF: > { %p516_p13 = scmp.ge.s32.totalorder %s617_s24, 2  ;;  %s431_s16 = sand.u32 1, %s605_s21  }
 0x2b2   : > { %s432_s18 = scalar_lea.sflag [#allocation3], %s431_s16 }
 0x2b3   : > { %p513_p0 = pnand %p516_p13, %p702_p6 }
 0x2b5   : > { %p514_p1 = pneg %p513_p0 }
 0x2b7   : > { %600 = dma.done.wait (%p514_p1), %s432_s18, 128  }
 0x2b8   : > { %602 = vsyncadd (%p514_p1), %s432_s18, 4294967168  ;;  %p16_p2 = scmp.ge.s32.totalorder %s685_s27, 4   ;;  %s786_s21 = smov %s609_s22 }
 0x2b9   : > { %s787_s22 = smov %s613_s23  ;;  %s788_s23 = smov %s696_s30 }
 0x2ba   : > { %s789_s24 = smov %s685_s27  ;;  %18 = sbr.rel (!%p16_p2) target bundleno = 3 (0x3), region = 79 }
 0x2bf   :  { %437 = vsyncpa [#allocation3], 1 }
 0x2c0   :  { %439 = vsyncpa [#allocation3 + $0x1], 1 }

</bundles_post_ra>
